<compile_context>
chip_gen: v6e
topology: v6e:2x2x1
jax: 0.10.0
libtpu: 0.0.40
codegen_flags: <defaults>
</compile_context>

<pallas_src>
import jax
import jax.numpy as jnp
from jax import lax
from jax.experimental import pallas as pl
from jax.experimental.pallas import tpu as pltpu

VN_EPS = 1e-6    # eps used to clamp the vector norms (VNLayerNorm.eps)
LN_EPS = 1e-5    # F.layer_norm default eps

_CHUNK = 256          # rows processed per inner-loop iteration
_ROW_TILE_CAP = 4096  # max rows per grid step (~1.5 MiB f32 per block)


def _vn_block(x, sel, sel_t, gamma, beta, out_dtype):
    """x: (t, D*C); sel: (D*C, D); sel_t: (D, D*C); gamma, beta: (1, D)."""
    xf = x.astype(jnp.float32)                                           # (t, F)

    # squared L2 norm of each length-C vector: tiny 0/1 selection matmul (MXU)
    sumsq = jnp.dot(xf * xf, sel,
                    preferred_element_type=jnp.float32,
                    precision=lax.Precision.HIGHEST)                     # (t, D)
    norms = jnp.sqrt(sumsq)                                              # (t, D)
    # 1 / max(norm, eps) == rsqrt(max(sumsq, eps^2))  (sqrt is monotone)
    inv_norm = lax.rsqrt(jnp.maximum(sumsq, VN_EPS * VN_EPS))            # (t, D)

    # LayerNorm over the feature axis D of the norms
    mean = jnp.mean(norms, axis=-1, keepdims=True)                       # (t, 1)
    centered = norms - mean
    var = jnp.mean(centered * centered, axis=-1, keepdims=True)
    inv_std = lax.rsqrt(var + LN_EPS)                                    # (t, 1)
    ln_out = centered * inv_std * gamma + beta                           # (t, D)

    # fuse the two full-tensor multiplies: o = x * (inv_norm * ln_out)
    scale = inv_norm * ln_out                                            # (t, D)
    scale_full = jnp.dot(scale, sel_t,
                         preferred_element_type=jnp.float32,
                         precision=lax.Precision.HIGHEST)                # (t, F)
    return (xf * scale_full).astype(out_dtype)


def _make_kernel(block_rows, chunk):
    if block_rows <= chunk:
        # tiny single block: process it in one shot
        def kernel(x_ref, s_ref, st_ref, g_ref, b_ref, o_ref):
            o_ref[...] = _vn_block(
                x_ref[...], s_ref[...], st_ref[...],
                g_ref[...].astype(jnp.float32),
                b_ref[...].astype(jnp.float32),
                o_ref.dtype)
        return kernel

    assert block_rows % chunk == 0
    n_chunks = block_rows // chunk

    def kernel(x_ref, s_ref, st_ref, g_ref, b_ref, o_ref):
        sel = s_ref[...]
        sel_t = st_ref[...]
        gamma = g_ref[...].astype(jnp.float32)
        beta = b_ref[...].astype(jnp.float32)

        # chunk the tile so the live working set stays within the vreg file
        @pl.loop(0, n_chunks)
        def _(i):
            r = pl.multiple_of(i * chunk, chunk)
            xc = x_ref[pl.ds(r, chunk), :]
            o_ref[pl.ds(r, chunk), :] = _vn_block(
                xc, sel, sel_t, gamma, beta, o_ref.dtype)

    return kernel


def _pick_row_tile(rows):
    if rows <= _CHUNK:
        return rows                                    # single full block
    t = min(_ROW_TILE_CAP, pl.cdiv(rows, _CHUNK) * _CHUNK)
    steps = max(2, pl.cdiv(rows, t))                   # keep >= 2 grid steps
    if steps <= 8 and steps % 2:
        steps += 1                                     # even steps: v7x's 2 TCs
    t = max(_CHUNK, pl.cdiv(pl.cdiv(rows, steps), _CHUNK) * _CHUNK)
    return t


def vn_layernorm(x, gamma, beta, *, row_tile=None):
    """x: (B, N, D, C); gamma, beta: (D,). Returns same shape/dtype as x."""
    B, N, D, C = x.shape
    rows = B * N
    feat = D * C

    x2d = x.reshape(rows, feat)        # free view of the original layout

    if row_tile is None:
        row_tile = _pick_row_tile(rows)
    grid = (pl.cdiv(rows, row_tile),)

    # constant 0/1 selection matrices for the in-kernel C-grouping (MXU)
    d_of_f = jnp.arange(feat, dtype=jnp.int32) // C
    sel = (d_of_f[:, None] == jnp.arange(D, dtype=jnp.int32)[None, :]
           ).astype(jnp.float32)                                    # (feat, D)
    sel_t = sel.T                                                   # (D, feat)

    gamma2 = gamma.reshape(1, D)
    beta2 = beta.reshape(1, D)

    kernel = _make_kernel(row_tile, _CHUNK)

    out = pl.pallas_call(
        kernel,
        out_shape=jax.ShapeDtypeStruct((rows, feat), x.dtype),
        grid_spec=pltpu.PrefetchScalarGridSpec(
            num_scalar_prefetch=0,
            grid=grid,
            in_specs=[
                pl.BlockSpec((row_tile, feat), lambda i: (i, 0)),
                pl.BlockSpec((feat, D), lambda i: (0, 0)),
                pl.BlockSpec((D, feat), lambda i: (0, 0)),
                pl.BlockSpec((1, D), lambda i: (0, 0)),
                pl.BlockSpec((1, D), lambda i: (0, 0)),
            ],
            out_specs=pl.BlockSpec((row_tile, feat), lambda i: (i, 0)),
        ),
        compiler_params=pltpu.CompilerParams(
            dimension_semantics=("parallel",)),
    )(x2d, sel, sel_t, gamma2, beta2)

    return out.reshape(B, N, D, C)


def vn_layernorm_ref(x, gamma, beta):
    # Pure-JAX reference matching the PyTorch forward.
    xf = x.astype(jnp.float32)
    norms = jnp.linalg.norm(xf, axis=-1)                    # (..., D)
    x_unit = xf / jnp.maximum(norms, VN_EPS)[..., None]
    mean = jnp.mean(norms, axis=-1, keepdims=True)
    var = jnp.mean((norms - mean) ** 2, axis=-1, keepdims=True)
    ln = (norms - mean) / jnp.sqrt(var + LN_EPS) * gamma + beta
    return (x_unit * ln[..., None]).astype(x.dtype)


if __name__ == "__main__":
    key = jax.random.PRNGKey(0)
    D, C = 32, 3                 # dim=32, 3D coordinate vectors
    # Deterministic parameter init, matching the module's __init__:
    gamma = jnp.ones((D,), jnp.float32)   # nn.Parameter(torch.ones(dim))
    beta = jnp.zeros((D,), jnp.float32)   # registered buffer torch.zeros(dim)

    k1, k2 = jax.random.split(key)

    # Test 1: small shape -> single full block (rows <= 256)
    x1 = jax.random.normal(k1, (2, 8, D, C), dtype=jnp.float32)
    out1 = jax.block_until_ready(vn_layernorm(x1, gamma, beta))
    ref1 = vn_layernorm_ref(x1, gamma, beta)
    assert out1.shape == x1.shape and out1.dtype == x1.dtype
    assert jnp.allclose(out1, ref1, atol=1e-4, rtol=1e-4), "mismatch (test 1)"

    # Test 2: rows > 256 -> 2 grid steps, chunked body, masked partial block
    x2 = jax.random.normal(k2, (3, 100, D, C), dtype=jnp.float32)
    out2 = jax.block_until_ready(vn_layernorm(x2, gamma, beta))
    ref2 = vn_layernorm_ref(x2, gamma, beta)
    assert out2.shape == x2.shape and out2.dtype == x2.dtype
    assert jnp.allclose(out2, ref2, atol=1e-4, rtol=1e-4), "mismatch (test 2)"

    print("KERNEL_OK")
</pallas_src>

<mosaic_0001>
module attributes {stable_mosaic.version = 11 : i64} {
  func.func @kernel(%arg0: i32, %arg1: memref<16x96xf32, #tpu.memory_space<vmem>>, %arg2: memref<96x32xf32, #tpu.memory_space<vmem>>, %arg3: memref<32x96xf32, #tpu.memory_space<vmem>>, %arg4: memref<1x32xf32, #tpu.memory_space<vmem>>, %arg5: memref<1x32xf32, #tpu.memory_space<vmem>>, %arg6: memref<16x96xf32, #tpu.memory_space<vmem>>) attributes {dimension_semantics = [#tpu.dimension_semantics<parallel>], iteration_bounds = array<i64: 1>, scalar_prefetch = 0 : i64, scratch_operands = 0 : i64, tpu.core_type = #tpu.core_type<tc>, window_params = [{transform_indices = @transform_0, window_bounds = array<i64: 16, 96>}, {pipeline_mode = #tpu.pipeline_mode<synchronous>, transform_indices = @transform_1, window_bounds = array<i64: 96, 32>}, {pipeline_mode = #tpu.pipeline_mode<synchronous>, transform_indices = @transform_2, window_bounds = array<i64: 32, 96>}, {pipeline_mode = #tpu.pipeline_mode<synchronous>, transform_indices = @transform_3, window_bounds = array<i64: 1, 32>}, {pipeline_mode = #tpu.pipeline_mode<synchronous>, transform_indices = @transform_4, window_bounds = array<i64: 1, 32>}, {transform_indices = @transform_5, window_bounds = array<i64: 16, 96>}]} {
    %c0 = arith.constant 0 : index
    %c0_0 = arith.constant 0 : index
    %0 = vector.load %arg1[%c0, %c0_0] : memref<16x96xf32, #tpu.memory_space<vmem>>, vector<16x96xf32>
    %c0_1 = arith.constant 0 : index
    %c0_2 = arith.constant 0 : index
    %1 = vector.load %arg2[%c0_1, %c0_2] : memref<96x32xf32, #tpu.memory_space<vmem>>, vector<96x32xf32>
    %c0_3 = arith.constant 0 : index
    %c0_4 = arith.constant 0 : index
    %2 = vector.load %arg3[%c0_3, %c0_4] : memref<32x96xf32, #tpu.memory_space<vmem>>, vector<32x96xf32>
    %c0_5 = arith.constant 0 : index
    %c0_6 = arith.constant 0 : index
    %3 = vector.load %arg4[%c0_5, %c0_6] : memref<1x32xf32, #tpu.memory_space<vmem>>, vector<1x32xf32>
    %c0_7 = arith.constant 0 : index
    %c0_8 = arith.constant 0 : index
    %4 = vector.load %arg5[%c0_7, %c0_8] : memref<1x32xf32, #tpu.memory_space<vmem>>, vector<1x32xf32>
    %5 = arith.mulf %0, %0 : vector<16x96xf32>
    %cst = arith.constant dense<0.000000e+00> : vector<16x32xf32>
    %6 = tpu.matmul %5, %1, %cst {dimension_numbers = #tpu.dot_dimension_numbers<[1], [0], [0], [1], [0, 0, 1, 1], [], []>, precision = #tpu.contract_precision<fp32>} : vector<16x96xf32>, vector<96x32xf32>, vector<16x32xf32> -> vector<16x32xf32>
    %7 = math.sqrt %6 : vector<16x32xf32>
    %cst_9 = arith.constant 9.99999996E-13 : f32
    %8 = vector.broadcast %cst_9 : f32 to vector<16x32xf32>
    %9 = arith.maximumf %6, %8 : vector<16x32xf32>
    %10 = math.rsqrt %9 : vector<16x32xf32>
    %cst_10 = arith.constant dense<0.000000e+00> : vector<16xf32>
    %11 = vector.multi_reduction <add>, %7, %cst_10 [1] : vector<16x32xf32> to vector<16xf32>
    %12 = vector.shape_cast %11 : vector<16xf32> to vector<16x1xf32>
    %cst_11 = arith.constant 3.200000e+01 : f32
    %13 = vector.broadcast %cst_11 : f32 to vector<16x1xf32>
    %14 = arith.divf %12, %13 : vector<16x1xf32>
    %15 = vector.broadcast %14 : vector<16x1xf32> to vector<16x32xf32>
    %16 = arith.subf %7, %15 : vector<16x32xf32>
    %17 = arith.mulf %16, %16 : vector<16x32xf32>
    %cst_12 = arith.constant dense<0.000000e+00> : vector<16xf32>
    %18 = vector.multi_reduction <add>, %17, %cst_12 [1] : vector<16x32xf32> to vector<16xf32>
    %19 = vector.shape_cast %18 : vector<16xf32> to vector<16x1xf32>
    %cst_13 = arith.constant 3.200000e+01 : f32
    %20 = vector.broadcast %cst_13 : f32 to vector<16x1xf32>
    %21 = arith.divf %19, %20 : vector<16x1xf32>
    %cst_14 = arith.constant 9.99999974E-6 : f32
    %22 = vector.broadcast %cst_14 : f32 to vector<16x1xf32>
    %23 = arith.addf %21, %22 : vector<16x1xf32>
    %24 = math.rsqrt %23 : vector<16x1xf32>
    %25 = vector.broadcast %24 : vector<16x1xf32> to vector<16x32xf32>
    %26 = arith.mulf %16, %25 : vector<16x32xf32>
    %27 = vector.broadcast %3 : vector<1x32xf32> to vector<16x32xf32>
    %28 = arith.mulf %26, %27 : vector<16x32xf32>
    %29 = vector.broadcast %4 : vector<1x32xf32> to vector<16x32xf32>
    %30 = arith.addf %28, %29 : vector<16x32xf32>
    %31 = arith.mulf %10, %30 : vector<16x32xf32>
    %cst_15 = arith.constant dense<0.000000e+00> : vector<16x96xf32>
    %32 = tpu.matmul %31, %2, %cst_15 {dimension_numbers = #tpu.dot_dimension_numbers<[1], [0], [0], [1], [0, 0, 1, 1], [], []>, precision = #tpu.contract_precision<fp32>} : vector<16x32xf32>, vector<32x96xf32>, vector<16x96xf32> -> vector<16x96xf32>
    %33 = arith.mulf %0, %32 : vector<16x96xf32>
    %c0_16 = arith.constant 0 : index
    %c0_17 = arith.constant 0 : index
    %34 = vector.load %arg6[%c0_16, %c0_17] : memref<16x96xf32, #tpu.memory_space<vmem>>, vector<16x96xf32>
    tpu.vector_store %arg6[%c0_16, %c0_17], %33 {strides = array<i32>} : memref<16x96xf32, #tpu.memory_space<vmem>>, vector<16x96xf32>,
    return
  }
  func.func @transform_0(%arg0: i32) -> (i32, i32) {
    %c0_i32 = arith.constant 0 : i32
    %c0_i32_0 = arith.constant 0 : i32
    return %arg0, %c0_i32 : i32, i32
  }
  func.func @transform_1(%arg0: i32) -> (i32, i32) {
    %c0_i32 = arith.constant 0 : i32
    %c0_i32_0 = arith.constant 0 : i32
    %c0_i32_1 = arith.constant 0 : i32
    return %c0_i32, %c0_i32_0 : i32, i32
  }
  func.func @transform_2(%arg0: i32) -> (i32, i32) {
    %c0_i32 = arith.constant 0 : i32
    %c0_i32_0 = arith.constant 0 : i32
    %c0_i32_1 = arith.constant 0 : i32
    return %c0_i32, %c0_i32_0 : i32, i32
  }
  func.func @transform_3(%arg0: i32) -> (i32, i32) {
    %c0_i32 = arith.constant 0 : i32
    %c0_i32_0 = arith.constant 0 : i32
    %c0_i32_1 = arith.constant 0 : i32
    return %c0_i32, %c0_i32_0 : i32, i32
  }
  func.func @transform_4(%arg0: i32) -> (i32, i32) {
    %c0_i32 = arith.constant 0 : i32
    %c0_i32_0 = arith.constant 0 : i32
    %c0_i32_1 = arith.constant 0 : i32
    return %c0_i32, %c0_i32_0 : i32, i32
  }
  func.func @transform_5(%arg0: i32) -> (i32, i32) {
    %c0_i32 = arith.constant 0 : i32
    %c0_i32_0 = arith.constant 0 : i32
    return %arg0, %c0_i32 : i32, i32
  }
}

</mosaic_0001>

<bundles_post_ra>
// kernel: tpu_custom_call.1
= control target key start
LH: loop header
LB: loop body
LE: loop exit
PB: predicated region body
PF: predicated region fallthrough
CT: control target
= control target key end

     0   :  { %s2181_s0 = inlined_call_operand.vmem [shape: f32[16,96], index: 0, kind: input, shape index: {}]   ;;  %s2182_s1 = inlined_call_operand.vmem [shape: f32[96,32], index: 1, kind: input, shape index: {}]   ;;  %s2183_s2 = inlined_call_operand.vmem [shape: f32[32,96], index: 2, kind: input, shape index: {}]   ;;  %s2184_s3 = inlined_call_operand.vmem [shape: f32[1,32], index: 3, kind: input, shape index: {}]   ;;  %s2185_s4 = inlined_call_operand.vmem [shape: f32[1,32], index: 4, kind: input, shape index: {}]   ;;  %s2186_s5 = inlined_call_operand.hbm [shape: f32[16,96], index: 5, kind: output, shape index: {}]  }
   0x1   :  { %v34_v0 = vld [vmem:[%s2182_s1 + $0x58] sm:$0xff]  ;;  %v33_v1 = vld [vmem:[%s2182_s1 + $0x50] sm:$0xff]  ;;  %v32_v2 = vld [vmem:[%s2182_s1 + $0x48] sm:$0xff] }
   0x2   :  { %v1729_v3 = vand.u32 4294901760, %v34_v0  ;;  %v1731_v4 = vand.u32 4294901760, %v33_v1  ;;  %v1733_v5 = vand.u32 4294901760, %v32_v2  ;;  %v31_v6 = vld [vmem:[%s2182_s1 + $0x40] sm:$0xff]  ;;  %v30_v7 = vld [vmem:[%s2182_s1 + $0x38] sm:$0xff]  ;;  %v29_v8 = vld [vmem:[%s2182_s1 + $0x30] sm:$0xff] }
   0x3   :  { %v1744_v9 = vand.u32 4294901760, %v31_v6  ;;  %v1746_v10 = vand.u32 4294901760, %v30_v7  ;;  %v1748_v11 = vand.u32 4294901760, %v29_v8  ;;  %v28_v12 = vld [vmem:[%s2182_s1 + $0x28] sm:$0xff]  ;;  %v27_v13 = vld [vmem:[%s2182_s1 + $0x20] sm:$0xff]  ;;  %v26_v18 = vld [vmem:[%s2182_s1 + $0x18] sm:$0xff] }
   0x4   :  { %1422 = vmatprep.subr.mxu0 %v1729_v3  ;;  %v1758_v14 = vsub.f32 %v34_v0, %v1729_v3  ;;  %v1761_v15 = vsub.f32 %v33_v1, %v1731_v4  ;;  %v1763_v16 = vand.u32 4294901760, %v28_v12  ;;  %v1766_v17 = vsub.f32 %v32_v2, %v1733_v5 }
   0x5   :  { %1423 = vmatpush3.msra.mxu0 %v1729_v3  ;;  %v1773_v19 = vsub.f32 %v31_v6, %v1744_v9  ;;  %v1776_v20 = vsub.f32 %v30_v7, %v1746_v10 }
   0x6   :  { %10 = vsyncpa [#allocation3], 0  ;;  %1424 = vmatprep.subr.mxu0 %v1731_v4  ;;  %v1780_v21 = vand.u32 4294901760, %v1758_v14  ;;  %v1783_v22 = vand.u32 4294901760, %v1761_v15  ;;  %v1786_v23 = vand.u32 4294901760, %v1766_v17  ;;  %v1788_v24 = vand.u32 4294901760, %v27_v13 }
   0x7   :  { %1425 = vmatpush3.msra.mxu0 %v1731_v4  ;;  %v1792_v25 = vand.u32 4294901760, %v1773_v19  ;;  %v1794_v26 = vand.u32 4294901760, %v26_v18  ;;  %v1797_v27 = vand.u32 4294901760, %v1776_v20  ;;  %v1800_v28 = vsub.f32 %v29_v8, %v1748_v11  ;;  %v25_v32 = vld [vmem:[%s2182_s1 + $0x10] sm:$0xff]  ;;  %v1819_v34 = vld [vmem:[%s2181_s0] sm:$0xff]  ;;  %v24_v39 = vld [vmem:[%s2182_s1 + $0x8] sm:$0xff] }
   0x8   :  { %1426 = vmatprep.subr.mxu0 %v1733_v5  ;;  %v159_v29 = vsub.f32 %v1758_v14, %v1780_v21  ;;  %v166_v30 = vsub.f32 %v1761_v15, %v1783_v22  ;;  %v173_v31 = vsub.f32 %v1766_v17, %v1786_v23  ;;  %v1813_v33 = vsub.f32 %v28_v12, %v1763_v16  ;;  %v1833_v40 = vld [vmem:[%s2181_s0 + $0x8] sm:$0xff]  ;;  %v23_v46 = vld [vmem:[%s2182_s1] sm:$0xff] }
   0x9   :  { %1427 = vmatpush3.msra.mxu0 %v1733_v5  ;;  %v180_v37 = vsub.f32 %v1773_v19, %v1792_v25  ;;  %v1825_v38 = vand.u32 4294901760, %v1800_v28  ;;  %v187_v41 = vsub.f32 %v1776_v20, %v1797_v27  ;;  %v1838_v42 = vand.u32 4294901760, %v25_v32 }
   0xa   :  { %1428 = vmatprep.subr.mxu0 %v1744_v9  ;;  %v160_v35 = vand.u32 4294901760, %v159_v29  ;;  %v167_v36 = vand.u32 4294901760, %v166_v30  ;;  %v1841_v43 = vsub.f32 %v27_v13, %v1788_v24  ;;  %vm43_vm0 = vcmask 785408  }
   0xb   :  { %1429 = vmatpush3.msra.mxu0 %v1744_v9  ;;  %v174_v44 = vand.u32 4294901760, %v173_v31  ;;  %v1845_v45 = vand.u32 4294901760, %v1813_v33  ;;  %v41_v47 = vmul.f32 %v1819_v34, %v1819_v34  ;;  %v1853_v48 = vsub.f32 %v26_v18, %v1794_v26 }
   0xc   :  { %1430 = vmatprep.subr.mxu0 %v1746_v10  ;;  %1449 = vmatprep.subr.mxu1 %v160_v35  ;;  %v1856_v49 = vand.u32 4294901760, %v24_v39  ;;  %v42_v50 = vmul.f32 %v1833_v40, %v1833_v40  ;;  %v181_v51 = vand.u32 4294901760, %v180_v37  ;;  %v194_v52 = vsub.f32 %v1800_v28, %v1825_v38 }
   0xd   :  { %1431 = vmatpush3.msra.mxu0 %v1746_v10  ;;  %1450 = vmatpush3.msra.mxu1 %v160_v35  ;;  %v1864_v53 = vand.u32 4294901760, %v1841_v43  ;;  %v45_v54 = vsel %vm43_vm0, %v41_v47, 0  ;;  %v1868_v55 = vand.u32 4294901760, %v23_v46  ;;  %v1874_v58 = vsub.f32 %v25_v32, %v1838_v42 }
   0xe   :  { %1432 = vmatprep.subr.mxu0 %v1748_v11  ;;  %1451 = vmatprep.subr.mxu1 %v167_v36  ;;  %v1870_v56 = vand.u32 4294901760, %v45_v54  ;;  %v48_v57 = vsel %vm43_vm0, %v42_v50, 0  ;;  %v188_v59 = vand.u32 4294901760, %v187_v41  ;;  %v201_v60 = vsub.f32 %v1813_v33, %v1845_v45 }
   0xf   :  { %1433 = vmatpush3.msra.mxu0 %v1748_v11  ;;  %1452 = vmatpush3.msra.mxu1 %v167_v36  ;;  %v1880_v61 = vand.u32 4294901760, %v1853_v48  ;;  %v1882_v62 = vand.u32 4294901760, %v48_v57  ;;  %v1889_v0 = vsub.f32 %v24_v39, %v1856_v49  ;;  %v195_v1 = vand.u32 4294901760, %v194_v52 }
  0x10   :  { %1434 = vmatprep.subr.mxu0 %v1763_v16  ;;  %1453 = vmatprep.subr.mxu1 %v174_v44  ;;  %v1886_v63 = vsub.f32 %v45_v54, %v1870_v56  ;;  %v208_v2 = vsub.f32 %v1841_v43, %v1864_v53  ;;  %v1900_v8 = vand.u32 4294901760, %v1874_v58  ;;  %v1903_v12 = vsub.f32 %v23_v46, %v1868_v55 }
  0x11   :  { %1435 = vmatpush3.msra.mxu0 %v1763_v16  ;;  %1454 = vmatpush3.msra.mxu1 %v174_v44  ;;  %v1895_v6 = vsub.f32 %v48_v57, %v1882_v62  ;;  %v202_v13 = vand.u32 4294901760, %v201_v60  ;;  %v215_v18 = vsub.f32 %v1853_v48, %v1880_v61  ;;  %v1914_v31 = vand.u32 4294901760, %v1889_v0 }
  0x12   :  { %1436 = vmatprep.subr.mxu0 %v1788_v24  ;;  %1455 = vmatprep.subr.mxu1 %v181_v51  ;;  %v129_v7 = vand.u32 4294901760, %v1886_v63  ;;  %v209_v32 = vand.u32 4294901760, %v208_v2  ;;  %v222_v36 = vsub.f32 %v1874_v58, %v1900_v8  ;;  %v1924_v37 = vand.u32 4294901760, %v1903_v12 }
  0x13   :  { %1437 = vmatpush3.msra.mxu0 %v1788_v24  ;;  %1456 = vmatpush3.msra.mxu1 %v181_v51  ;;  %v139_v29 = vand.u32 4294901760, %v1895_v6  ;;  %v216_v41 = vand.u32 4294901760, %v215_v18  ;;  %v229_v46 = vsub.f32 %v1889_v0, %v1914_v31  ;;  %vm700_vm4 = vcmask 261120   ;;  %v37_v18 = vld [vmem:[%s2183_s2 + $0x10] sm:$0xff] }
  0x14   :  { %1438 = vmatprep.subr.mxu0 %v1794_v26  ;;  %1457 = vmatprep.subr.mxu1 %v188_v59  ;;  %v130_v30 = vsub.f32 %v1886_v63, %v129_v7  ;;  %v223_v47 = vand.u32 4294901760, %v222_v36  ;;  %v236_v50 = vsub.f32 %v1903_v12, %v1924_v37 }
  0x15   :  { %1439 = vmatpush3.msra.mxu0 %v1794_v26  ;;  %1458 = vmatpush3.msra.mxu1 %v188_v59  ;;  %v140_v35 = vsub.f32 %v1895_v6, %v139_v29  ;;  %v230_v51 = vand.u32 4294901760, %v229_v46 }
  0x16   :  { %1440 = vmatprep.subr.mxu0 %v1838_v42  ;;  %1459 = vmatprep.subr.mxu1 %v195_v1  ;;  %v131_v39 = vand.u32 4294901760, %v130_v30  ;;  %v237_v52 = vand.u32 4294901760, %v236_v50  ;;  %v2081_v30 = vand.u32 4294901760, %v37_v18 }
  0x17   :  { %1441 = vmatpush3.msra.mxu0 %v1838_v42  ;;  %1460 = vmatpush3.msra.mxu1 %v195_v1  ;;  %v141_v44 = vand.u32 4294901760, %v140_v35 }
  0x18   :  { %1442 = vmatprep.subr.mxu0 %v1856_v49  ;;  %1461 = vmatprep.subr.mxu1 %v202_v13  ;;  %v2092_v35 = vsub.f32 %v37_v18, %v2081_v30 }
  0x19   :  { %1443 = vmatpush3.msra.mxu0 %v1856_v49  ;;  %1462 = vmatpush3.msra.mxu1 %v202_v13 }
  0x1a   :  { %1444 = vmatprep.subr.mxu0 %v1868_v55  ;;  %1463 = vmatprep.subr.mxu1 %v209_v32 }
  0x1b   :  { %1445 = vmatpush3.msra.mxu0 %v1868_v55  ;;  %1464 = vmatpush3.msra.mxu1 %v209_v32 }
  0x1c   :  { %1446 = vmatprep.mubr.f32.mxu0 %v131_v39  ;;  %1465 = vmatprep.subr.mxu1 %v216_v41 }
  0x1d   :  { %1476 = vmatprep.subr.mxu0 %v1758_v14  ;;  %1447 = vmatmul.mubr.f32.vlgmr.msra.gmra.mxu0 %v141_v44 }
  0x1e   :  { %1466 = vmatpush3.msra.mxu1 %v216_v41  ;;  %1477 = vmatpush3.msra.mxu0 %v1758_v14  ;;  %v2104_v41 = vand.u32 4294901760, %v2092_v35 }
  0x1f   :  { %1467 = vmatprep.subr.mxu1 %v223_v47  ;;  %1478 = vmatprep.subr.mxu0 %v1761_v15 }
  0x20   :  { %1468 = vmatpush3.msra.mxu1 %v223_v47  ;;  %1479 = vmatpush3.msra.mxu0 %v1761_v15  ;;  %v876_v50 = vsub.f32 %v2092_v35, %v2104_v41 }
  0x21   :  { %1469 = vmatprep.subr.mxu1 %v230_v51  ;;  %1480 = vmatprep.subr.mxu0 %v1766_v17 }
  0x22   :  { %1470 = vmatpush3.msra.mxu1 %v230_v51  ;;  %1481 = vmatpush3.msra.mxu0 %v1766_v17 }
  0x23   :  { %1471 = vmatprep.subr.mxu1 %v237_v52  ;;  %1482 = vmatprep.subr.mxu0 %v1773_v19 }
  0x24   :  { %1472 = vmatpush3.msra.mxu1 %v237_v52  ;;  %1473 = vmatprep.mubr.f32.mxu1 %v1870_v56 }
  0x25   :  { %1483 = vmatpush3.msra.mxu0 %v1773_v19  ;;  %1474 = vmatmul.mubr.f32.vlgmr.msra.gmra.mxu1 %v1882_v62 }
  0x26   :  { %1484 = vmatprep.subr.mxu0 %v1776_v20  ;;  %1503 = vmatprep.subr.mxu1 %v1729_v3 }
  0x27   :  { %1485 = vmatpush3.msra.mxu0 %v1776_v20  ;;  %1504 = vmatpush3.msra.mxu1 %v1729_v3 }
  0x28   :  { %1486 = vmatprep.subr.mxu0 %v1800_v28  ;;  %1505 = vmatprep.subr.mxu1 %v1731_v4 }
  0x29   :  { %1487 = vmatpush3.msra.mxu0 %v1800_v28  ;;  %1506 = vmatpush3.msra.mxu1 %v1731_v4 }
  0x2a   :  { %1488 = vmatprep.subr.mxu0 %v1813_v33  ;;  %1507 = vmatprep.subr.mxu1 %v1733_v5 }
  0x2b   :  { %1489 = vmatpush3.msra.mxu0 %v1813_v33  ;;  %1508 = vmatpush3.msra.mxu1 %v1733_v5 }
  0x2c   :  { %1490 = vmatprep.subr.mxu0 %v1841_v43  ;;  %1509 = vmatprep.subr.mxu1 %v1744_v9 }
  0x2d   :  { %1491 = vmatpush3.msra.mxu0 %v1841_v43  ;;  %1510 = vmatpush3.msra.mxu1 %v1744_v9 }
  0x2e   :  { %1492 = vmatprep.subr.mxu0 %v1853_v48  ;;  %1511 = vmatprep.subr.mxu1 %v1746_v10 }
  0x2f   :  { %1493 = vmatpush3.msra.mxu0 %v1853_v48  ;;  %1512 = vmatpush3.msra.mxu1 %v1746_v10 }
  0x30   :  { %1494 = vmatprep.subr.mxu0 %v1874_v58  ;;  %1513 = vmatprep.subr.mxu1 %v1748_v11 }
  0x31   :  { %1495 = vmatpush3.msra.mxu0 %v1874_v58  ;;  %1514 = vmatpush3.msra.mxu1 %v1748_v11 }
  0x32   :  { %1496 = vmatprep.subr.mxu0 %v1889_v0  ;;  %1515 = vmatprep.subr.mxu1 %v1763_v16 }
  0x33   :  { %1497 = vmatpush3.msra.mxu0 %v1889_v0  ;;  %1516 = vmatpush3.msra.mxu1 %v1763_v16 }
  0x34   :  { %1498 = vmatprep.subr.mxu0 %v1903_v12  ;;  %1517 = vmatprep.subr.mxu1 %v1788_v24 }
  0x35   :  { %1499 = vmatpush3.msra.mxu0 %v1903_v12  ;;  %1500 = vmatprep.mubr.f32.mxu0 %v1886_v63  ;;  %v38_v12 = vld [vmem:[%s2183_s2 + $0x18] sm:$0xff] }
  0x36   :  { %1518 = vmatpush3.msra.mxu1 %v1788_v24  ;;  %1501 = vmatmul.mubr.f32.vlgmr.msra.gmra.mxu0 %v1895_v6  ;;  %v2073_v13 = vand.u32 4294901760, %v38_v12 }
  0x37   :  { %1519 = vmatprep.subr.mxu1 %v1794_v26  ;;  %1530 = vmatprep.subr.mxu0 %v1780_v21 }
  0x38   :  { %1520 = vmatpush3.msra.mxu1 %v1794_v26  ;;  %1531 = vmatpush3.msra.mxu0 %v1780_v21 }
  0x39   :  { %1521 = vmatprep.subr.mxu1 %v1838_v42  ;;  %1532 = vmatprep.subr.mxu0 %v1783_v22 }
  0x3a   :  { %1522 = vmatpush3.msra.mxu1 %v1838_v42  ;;  %1533 = vmatpush3.msra.mxu0 %v1783_v22 }
  0x3b   :  { %1523 = vmatprep.subr.mxu1 %v1856_v49  ;;  %1534 = vmatprep.subr.mxu0 %v1786_v23 }
  0x3c   :  { %1524 = vmatpush3.msra.mxu1 %v1856_v49  ;;  %1535 = vmatpush3.msra.mxu0 %v1786_v23 }
  0x3d   :  { %1525 = vmatprep.subr.mxu1 %v1868_v55  ;;  %1536 = vmatprep.subr.mxu0 %v1792_v25 }
  0x3e   :  { %1526 = vmatpush3.msra.mxu1 %v1868_v55  ;;  %1527 = vmatprep.mubr.f32.mxu1 %v129_v7 }
  0x3f   :  { %1537 = vmatpush3.msra.mxu0 %v1792_v25  ;;  %1528 = vmatmul.mubr.f32.vlgmr.msra.gmra.mxu1 %v139_v29  ;;  %v2079_v29 = vsub.f32 %v38_v12, %v2073_v13 }
  0x40   :  { %1538 = vmatprep.subr.mxu0 %v1797_v27  ;;  %1557 = vmatprep.subr.mxu1 %v1729_v3 }
  0x41   :  { %1539 = vmatpush3.msra.mxu0 %v1797_v27  ;;  %1558 = vmatpush3.msra.mxu1 %v1729_v3  ;;  %v2089_v32 = vand.u32 4294901760, %v2079_v29 }
  0x42   :  { %1540 = vmatprep.subr.mxu0 %v1825_v38  ;;  %1559 = vmatprep.subr.mxu1 %v1731_v4 }
  0x43   :  { %1541 = vmatpush3.msra.mxu0 %v1825_v38  ;;  %1560 = vmatpush3.msra.mxu1 %v1731_v4  ;;  %v869_v39 = vsub.f32 %v2079_v29, %v2089_v32 }
  0x44   :  { %1542 = vmatprep.subr.mxu0 %v1845_v45  ;;  %1561 = vmatprep.subr.mxu1 %v1733_v5 }
  0x45   :  { %1543 = vmatpush3.msra.mxu0 %v1845_v45  ;;  %1562 = vmatpush3.msra.mxu1 %v1733_v5  ;;  %v870_v47 = vand.u32 4294901760, %v869_v39 }
  0x46   :  { %1544 = vmatprep.subr.mxu0 %v1864_v53  ;;  %1563 = vmatprep.subr.mxu1 %v1744_v9 }
  0x47   :  { %1545 = vmatpush3.msra.mxu0 %v1864_v53  ;;  %1564 = vmatpush3.msra.mxu1 %v1744_v9 }
  0x48   :  { %1546 = vmatprep.subr.mxu0 %v1880_v61  ;;  %1565 = vmatprep.subr.mxu1 %v1746_v10 }
  0x49   :  { %1547 = vmatpush3.msra.mxu0 %v1880_v61  ;;  %1566 = vmatpush3.msra.mxu1 %v1746_v10 }
  0x4a   :  { %1548 = vmatprep.subr.mxu0 %v1900_v8  ;;  %1567 = vmatprep.subr.mxu1 %v1748_v11 }
  0x4b   :  { %1549 = vmatpush3.msra.mxu0 %v1900_v8  ;;  %1568 = vmatpush3.msra.mxu1 %v1748_v11 }
  0x4c   :  { %1550 = vmatprep.subr.mxu0 %v1914_v31  ;;  %1569 = vmatprep.subr.mxu1 %v1763_v16 }
  0x4d   :  { %1551 = vmatpush3.msra.mxu0 %v1914_v31  ;;  %1570 = vmatpush3.msra.mxu1 %v1763_v16  ;;  %v36_v31 = vld [vmem:[%s2183_s2 + $0x8] sm:$0xff] }
  0x4e   :  { %1552 = vmatprep.subr.mxu0 %v1924_v37  ;;  %1571 = vmatprep.subr.mxu1 %v1788_v24  ;;  %v2094_v36 = vand.u32 4294901760, %v36_v31 }
  0x4f   :  { %1553 = vmatpush3.msra.mxu0 %v1924_v37  ;;  %1554 = vmatprep.mubr.f32.mxu0 %v1870_v56  ;;  %v35_v37 = vld [vmem:[%s2183_s2] sm:$0xff] }
  0x50   :  { %1572 = vmatpush3.msra.mxu1 %v1788_v24  ;;  %1555 = vmatmul.mubr.f32.vlgmr.msra.gmra.mxu0 %v1882_v62  ;;  %v2107_v44 = vsub.f32 %v36_v31, %v2094_v36  ;;  %v2109_v46 = vand.u32 4294901760, %v35_v37 }
  0x51   :  { %1573 = vmatprep.subr.mxu1 %v1794_v26  ;;  %1581 = vmatprep.mubr.f32.mxu1 %v1870_v56 }
  0x52   :  { %1574 = vmatpush3.msra.mxu1 %v1794_v26  ;;  %1584 = vmatprep.subr.mxu0 %v2073_v13  ;;  %v2116_v51 = vand.u32 4294901760, %v2107_v44  ;;  %v2119_v52 = vsub.f32 %v35_v37, %v2109_v46 }
  0x53   :  { %1575 = vmatprep.subr.mxu1 %v1838_v42  ;;  %1585 = vmatpush3.msra.mxu0 %v2073_v13 }
  0x54   :  { %1576 = vmatpush3.msra.mxu1 %v1838_v42  ;;  %1586 = vmatprep.subr.mxu0 %v2081_v30 }
  0x55   :  { %1577 = vmatprep.subr.mxu1 %v1856_v49  ;;  %1587 = vmatpush3.msra.mxu0 %v2081_v30 }
  0x56   :  { %1578 = vmatpush3.msra.mxu1 %v1856_v49  ;;  %1588 = vmatprep.subr.mxu0 %v2094_v36 }
  0x57   :  { %1579 = vmatprep.subr.mxu1 %v1868_v55  ;;  %1589 = vmatpush3.msra.mxu0 %v2094_v36 }
  0x58   :  { %1580 = vmatpush3.msra.mxu1 %v1868_v55  ;;  %1590 = vmatprep.subr.mxu0 %v2109_v46 }
  0x59   :  { %1582 = vmatmul.mubr.f32.vlgmr.msra.gmra.mxu1 %v1882_v62  ;;  %1591 = vmatpush3.msra.mxu0 %v2109_v46 }
  0x5a   :  { %1595 = vmatprep.subr.mxu1 %v870_v47  ;;  %1606 = vmatprep.subr.mxu0 %v2079_v29 }
  0x5b   :  { %1596 = vmatpush3.msra.mxu1 %v870_v47 }
  0xdd   :  { %v1448_v3 = vpop.f32.mrf.mxu0 }
  0xdf   :  { %v133_v4 = vpop.f32.mrf.mxu0 }
  0xe5   :  { %v1475_v5 = vpop.f32.mrf.mxu1 }
  0xe6   :  { %v281_v15 = vadd.f32 %v1475_v5, %v1448_v3  ;;  %v877_v3 = vand.u32 4294901760, %v876_v50  ;;  %v2126_v5 = vand.u32 4294901760, %v2119_v52 }
  0xe7   :  { %v274_v10 = vpop.f32.mrf.mxu1 }
  0xe8   :  { %v275_v17 = vadd.f32 %v274_v10, %v133_v4  ;;  %v883_v4 = vsub.f32 %v2107_v44, %v2116_v51  ;;  %1597 = vmatprep.subr.mxu1 %v877_v3  ;;  %v890_v10 = vsub.f32 %v2119_v52, %v2126_v5 }
  0xe9   :  { %1598 = vmatpush3.msra.mxu1 %v877_v3 }
  0xf6   :  { %v1502_v9 = vpop.f32.mrf.mxu0 }
  0xf7   :  { %v384_v19 = vadd.f32 %v1502_v9, %v281_v15  ;;  %v884_v9 = vand.u32 4294901760, %v883_v4 }
  0xf8   :  { %v376_v11 = vpop.f32.mrf.mxu0 }
  0xf9   :  { %v377_v21 = vadd.f32 %v376_v11, %v275_v17  ;;  %1599 = vmatprep.subr.mxu1 %v884_v9  ;;  %v891_v11 = vand.u32 4294901760, %v890_v10 }
  0xfa   :  { %1600 = vmatpush3.msra.mxu1 %v884_v9 }
  0xfb   :  { %1601 = vmatprep.subr.mxu1 %v891_v11 }
  0xfc   :  { %1602 = vmatpush3.msra.mxu1 %v891_v11 }
  0xfd   :  { %1617 = vmatprep.subr.mxu1 %v2073_v13 }
  0xff   :  { %v1529_v14 = vpop.f32.mrf.mxu1 }
 0x100   :  { %v477_v22 = vadd.f32 %v1529_v14, %v384_v19 }
 0x101   :  { %v468_v20 = vpop.f32.mrf.mxu1 }
 0x102   :  { %v469_v24 = vadd.f32 %v468_v20, %v377_v21 }
 0x110   :  { %v1556_v16 = vpop.f32.mrf.mxu0 }
 0x111   :  { %v590_v25 = vadd.f32 %v1556_v16, %v477_v22 }
 0x112   :  { %v583_v23 = vpop.f32.mrf.mxu0 }
 0x113   :  { %v584_v27 = vadd.f32 %v583_v23, %v469_v24  ;;  %v1300_v24 = vld [vmem:[%s2184_s3] ss:$0 sm:$0xff]  ;;  %s1687_s3 = smov [#allocation2]  }
 0x119   :  { %v1583_v26 = vpop.f32.mrf.mxu1 }
 0x11a   :  { %v2042_v28 = vadd.f32 %v1583_v26, %v590_v25  ;;  %v1301_v26 = vld [vmem:[%s2185_s4] ss:$0 sm:$0xff]  ;;  %s1289_s4 = sshll.u32 %s1687_s3, 4  ;;  %s1290_s4 = int_to_ptr.vmem [resolvable:$true] %s1289_s4 }
 0x11b   :  { %v672_v33 = vpop.f32.mrf.mxu1  ;;  %s1665_s30 = scalar_lea.vmem %s1290_s4, 256  ;;  %p1670_p1 = scmp.lt.s32.totalorder %s1290_s4, %s1290_s4 }
 0x11c   :  { %v2044_v38 = vadd.f32 %v672_v33, %v584_v27  ;;  %1653 = vrsqrt.f32 %v2042_v28  ;;  %vm691_vm2 = vcmp.eq.f32.partialorder %v2042_v28, inf  ;;  %v694_v56 = vand.u32 2147483648, %v2042_v28  ;;  %p1666_p0 = scmp.ne.s32.totalorder %s1290_s4, %s1665_s30  ;;  %p1671_p2 = scmp.lt.s32.totalorder %s1665_s30, %s1665_s30 }
 0x11d   :  { %vm693_vm5 = vcmp.eq.f32.partialorder %v2042_v28, 0.0  ;;  %v697_v22 = vmax.f32 %v2042_v28, 1e-12 }
 0x11e   :  { %1655 = vrsqrt.f32 %v2044_v38  ;;  %vm684_vm1 = vcmp.eq.f32.partialorder %v2044_v38, inf  ;;  %v687_v49 = vand.u32 2147483648, %v2044_v38  ;;  %vm686_vm3 = vcmp.eq.f32.partialorder %v2044_v38, 0.0  ;;  %p1672_p3 = por %p1671_p2, %p1670_p1 }
 0x11f   :  { %v696_v21 = vmax.f32 %v2044_v38, 1e-12 }
 0x120   :  { %p1673_p4 = pnand %p1672_p3, %p1666_p0 }
 0x129   :  { %v1654_v42 = vpop.eup %1653 }
 0x12a   :  { %v690_v43 = vmul.f32 %v1654_v42, %v2042_v28 }
 0x12b   :  { %v1656_v45 = vpop.eup %1655 }
 0x12c   :  { %v683_v48 = vmul.f32 %v1656_v45, %v2044_v38  ;;  %v692_v54 = vsel %vm691_vm2, %v2042_v28, %v690_v43 }
 0x12d   :  { %v695_v58 = vsel %vm693_vm5, %v694_v56, %v692_v54 }
 0x12e   :  { %v685_v53 = vsel %vm684_vm1, %v2044_v38, %v683_v48  ;;  %v704_v59 = vsel %vm700_vm4, %v695_v58, 0.0 }
 0x12f   :  { %v688_v55 = vsel %vm686_vm3, %v687_v49, %v685_v53 }
 0x130   :  { %v701_v57 = vsel %vm700_vm4, %v688_v55, 0.0 }
 0x131   :  { %702 = vadd.xlane.f32.xlu0 %v701_v57 }
 0x135   :  { %705 = vadd.xlane.f32.xlu0 %v704_v59 }
 0x1ba   :  { %v703_v60 = vpop.xlane.xlu0 %702 }
 0x1bb   :  { %v708_v61 = vmul.f32 0.03125, %v703_v60 }
 0x1bd   :  { %v2060_v62 = vsub.f32 %v688_v55, %v708_v61 }
 0x1be   :  { %v706_v63 = vpop.xlane.xlu0 %705 }
 0x1bf   :  { %v709_v0 = vmul.f32 0.03125, %v706_v63  ;;  %v712_v1 = vmul.f32 %v2060_v62, %v2060_v62 }
 0x1c1   :  { %v2064_v2 = vsub.f32 %v695_v58, %v709_v0  ;;  %v714_v6 = vsel %vm700_vm4, %v712_v1, 0.0 }
 0x1c2   :  { %715 = vadd.xlane.f32.xlu1 %v714_v6 }
 0x1c3   :  { %v713_v7 = vmul.f32 %v2064_v2, %v2064_v2 }
 0x1c5   :  { %v717_v8 = vsel %vm700_vm4, %v713_v7, 0.0 }
 0x1c6   :  { %718 = vadd.xlane.f32.xlu1 %v717_v8 }
 0x24b   :  { %v716_v14 = vpop.xlane.xlu1 %715 }
 0x24c   :  { %v720_v15 = vmul.f32 0.03125, %v716_v14 }
 0x24e   :  { %v722_v16 = vadd.f32 1e-05, %v720_v15 }
 0x24f   :  { %v719_v17 = vpop.xlane.xlu1 %718 }
 0x250   :  { %1657 = vrsqrt.f32 %v722_v16  ;;  %v721_v19 = vmul.f32 0.03125, %v719_v17 }
 0x252   :  { %v723_v20 = vadd.f32 1e-05, %v721_v19 }
 0x254   :  { %1659 = vrsqrt.f32 %v723_v20 }
 0x255   :  { %1661 = vrsqrt.f32 %v696_v21 }
 0x256   :  { %1663 = vrsqrt.f32 %v697_v22 }
 0x25d   :  { %v1658_v23 = vpop.eup %1657 }
 0x25e   :  { %v726_v25 = vmul.f32 %v1658_v23, %v2060_v62 }
 0x260   :  { %v734_v27 = vmul.f32 %v1300_v24, %v726_v25 }
 0x261   :  { %v1660_v33 = vpop.eup %1659 }
 0x262   :  { %v727_v38 = vmul.f32 %v1660_v33, %v2064_v2  ;;  %v742_v42 = vadd.f32 %v1301_v26, %v734_v27  ;;  %v1662_v43 = vpop.eup %1661 }
 0x263   :  { %v1664_v53 = vpop.eup %1663 }
 0x264   :  { %v744_v45 = vmul.f32 %v1662_v43, %v742_v42  ;;  %v735_v28 = vmul.f32 %v1300_v24, %v727_v38 }
 0x266   :  { %v747_v48 = vsel %vm700_vm4, %v744_v45, 0  ;;  %v743_v49 = vadd.f32 %v1301_v26, %v735_v28 }
 0x267   :  { %v821_v54 = vand.u32 4294901760, %v747_v48 }
 0x268   :  { %v745_v55 = vmul.f32 %v1664_v53, %v743_v49 }
 0x269   :  { %1603 = vmatprep.mubr.f32.mxu1 %v821_v54  ;;  %v822_v56 = vsub.f32 %v747_v48, %v821_v54 }
 0x26a   :  { %v750_v57 = vsel %vm700_vm4, %v745_v55, 0 }
 0x26b   :  { %v831_v58 = vand.u32 4294901760, %v750_v57  ;;  %v823_v59 = vand.u32 4294901760, %v822_v56 }
 0x26d   :  { %v832_v60 = vsub.f32 %v750_v57, %v831_v58  ;;  %1604 = vmatmul.mubr.f32.vlgmr.msra.gmra.mxu1 %v831_v58  ;;  %v824_v61 = vsub.f32 %v822_v56, %v823_v59 }
 0x26e   :  { %1618 = vmatpush3.msra.mxu1 %v2073_v13  ;;  %1625 = vmatprep.mubr.f32.mxu1 %v823_v59 }
 0x26f   :  { %1619 = vmatprep.subr.mxu1 %v2081_v30  ;;  %v825_v62 = vand.u32 4294901760, %v824_v61  ;;  %v833_v63 = vand.u32 4294901760, %v832_v60 }
 0x270   :  { %1620 = vmatpush3.msra.mxu1 %v2081_v30 }
 0x271   :  { %1621 = vmatprep.subr.mxu1 %v2094_v36  ;;  %1592 = vmatprep.mubr.f32.mxu0 %v825_v62  ;;  %v834_v0 = vsub.f32 %v832_v60, %v833_v63 }
 0x272   :  { %1622 = vmatpush3.msra.mxu1 %v2094_v36 }
 0x273   :  { %1623 = vmatprep.subr.mxu1 %v2109_v46  ;;  %v835_v1 = vand.u32 4294901760, %v834_v0 }
 0x274   :  { %1624 = vmatpush3.msra.mxu1 %v2109_v46 }
 0x275   :  { %1626 = vmatmul.mubr.f32.vlgmr.msra.gmra.mxu1 %v833_v63  ;;  %1639 = vmatprep.subr.mxu1 %v2073_v13 }
 0x276   :  { %1593 = vmatmul.mubr.f32.vlgmr.msra.gmra.mxu0 %v835_v1  ;;  %1640 = vmatpush3.msra.mxu1 %v2073_v13 }
 0x277   :  { %1607 = vmatpush3.msra.mxu0 %v2079_v29  ;;  %1647 = vmatprep.mubr.f32.mxu1 %v821_v54 }
 0x278   :  { %1608 = vmatprep.subr.mxu0 %v2092_v35  ;;  %1614 = vmatprep.mubr.f32.mxu0 %v822_v56 }
 0x279   :  { %1641 = vmatprep.subr.mxu1 %v2081_v30  ;;  %1609 = vmatpush3.msra.mxu0 %v2092_v35 }
 0x27a   :  { %1642 = vmatpush3.msra.mxu1 %v2081_v30  ;;  %1610 = vmatprep.subr.mxu0 %v2107_v44 }
 0x27b   :  { %1643 = vmatprep.subr.mxu1 %v2094_v36  ;;  %1611 = vmatpush3.msra.mxu0 %v2107_v44 }
 0x27c   :  { %1644 = vmatpush3.msra.mxu1 %v2094_v36  ;;  %1612 = vmatprep.subr.mxu0 %v2119_v52 }
 0x27d   :  { %1645 = vmatprep.subr.mxu1 %v2109_v46  ;;  %1613 = vmatpush3.msra.mxu0 %v2119_v52 }
 0x27e   :  { %1646 = vmatpush3.msra.mxu1 %v2109_v46  ;;  %1615 = vmatmul.mubr.f32.vlgmr.msra.gmra.mxu0 %v832_v60 }
 0x27f   :  { %1628 = vmatprep.subr.mxu0 %v2089_v32  ;;  %1648 = vmatmul.mubr.f32.vlgmr.msra.gmra.mxu1 %v831_v58 }
 0x280   :  { %1629 = vmatpush3.msra.mxu0 %v2089_v32  ;;  %1636 = vmatprep.mubr.f32.mxu0 %v821_v54 }
 0x281   :  { %1630 = vmatprep.subr.mxu0 %v2104_v41 }
 0x282   :  { %1631 = vmatpush3.msra.mxu0 %v2104_v41 }
 0x283   :  { %1632 = vmatprep.subr.mxu0 %v2116_v51 }
 0x284   :  { %1633 = vmatpush3.msra.mxu0 %v2116_v51 }
 0x285   :  { %1634 = vmatprep.subr.mxu0 %v2126_v5 }
 0x286   :  { %1635 = vmatpush3.msra.mxu0 %v2126_v5 }
 0x287   :  { %1637 = vmatmul.mubr.f32.vlgmr.msra.gmra.mxu0 %v831_v58 }
 0x32d   :  { %v1605_v6 = vpop.f32.mrf.mxu1 }
 0x32f   :  { %v928_v12 = vpop.f32.mrf.mxu1 }
 0x335   :  { %v1627_v18 = vpop.f32.mrf.mxu1 }
 0x336   :  { %v1594_v2 = vpop.f32.mrf.mxu0 }
 0x337   :  { %v935_v13 = vadd.f32 %v1605_v6, %v1594_v2  ;;  %v1098_v35 = vpop.f32.mrf.mxu1 }
 0x338   :  { %v827_v7 = vpop.f32.mrf.mxu0 }
 0x339   :  { %v929_v30 = vadd.f32 %v928_v12, %v827_v7 }
 0x33e   :  { %v1616_v8 = vpop.f32.mrf.mxu0 }
 0x33f   :  { %v1022_v31 = vadd.f32 %v1616_v8, %v935_v13  ;;  %v1649_v37 = vpop.f32.mrf.mxu1 }
 0x340   :  { %v1014_v29 = vpop.f32.mrf.mxu0 }
 0x341   :  { %v1015_v32 = vadd.f32 %v1014_v29, %v929_v30  ;;  %v1107_v36 = vadd.f32 %v1627_v18, %v1022_v31  ;;  %v1270_v51 = vpop.f32.mrf.mxu1 }
 0x343   :  { %v1099_v44 = vadd.f32 %v1098_v35, %v1015_v32 }
 0x347   :  { %v1638_v39 = vpop.f32.mrf.mxu0 }
 0x348   :  { %v1196_v41 = vadd.f32 %v1638_v39, %v1107_v36 }
 0x349   :  { %v1189_v46 = vpop.f32.mrf.mxu0 }
 0x34a   :  { %v1277_v47 = vadd.f32 %v1649_v37, %v1196_v41  ;;  %v1190_v50 = vadd.f32 %v1189_v46, %v1099_v44 }
 0x34c   :  { %v1281_v52 = vmul.f32 %v1277_v47, %v1833_v40  ;;  %v1271_v3 = vadd.f32 %v1270_v51, %v1190_v50 }
 0x34e   :  { %1283 = vst.msk [vmem:[#allocation2 + $0x8] sm:$0xff] %vm43_vm0, %v1281_v52  ;;  %v1280_v4 = vmul.f32 %v1271_v3, %v1819_v34 }
 0x350   :  { %1282 = vst.msk [vmem:[#allocation2] sm:$0xff] %vm43_vm0, %v1280_v4 }
 0x351   :  { %1676 = shalt.err (!%p1673_p4)
}
 0x352   :  { %s1688_s6 = smov 128   ;;  %s1689_s7 = smov 8  }
 0x353   :  { %1295 = dma.vmem_to_hbm [thread:$0]  %s1290_s4, 256, %s2186_s5, [#allocation3], %s1688_s6, %s1688_s6, %s1689_s7  }
 0x354   :  { %1685 = dma.done.wait [#allocation3], 256  }
 0x355   :  { %1686 = vsyncadd [#allocation3], 4294967040 }
 0x356   :  { %1299 = vsyncpa [#allocation3], 1 }

</bundles_post_ra>
